<compile_context>
chip_gen: v7x
topology: tpu7x:2x2x1
jax: 0.10.0
libtpu: 0.0.40
codegen_flags: <defaults>
</compile_context>

<pallas_src>
import jax
import jax.numpy as jnp
from jax.experimental import pallas as pl
from jax.experimental.pallas import tpu as pltpu

EPS = 1e-5

_COMPILER_PARAMS = pltpu.CompilerParams(
    dimension_semantics=("parallel",),          # M-tiles independent -> megacore
    vmem_limit_bytes=32 * 1024 * 1024,          # safe on v5e/v6e/v7x
)


# ---------------------------------------------------------------------------
# Kernels
# ---------------------------------------------------------------------------
def _conv_stats_kernel(p_ref, w_ref, conv_ref, stats_ref):
    """conv tile = patches @ weights (MXU) + per-tile partial BN statistics."""
    acc = jnp.dot(p_ref[...], w_ref[...], preferred_element_type=jnp.float32)
    conv_ref[...] = acc
    s = jnp.sum(acc, axis=0, keepdims=True)           # (1, Cpad)  per-channel sum
    sq = jnp.sum(acc * acc, axis=0, keepdims=True)    # (1, Cpad)  per-channel sumsq
    stats_ref[0] = jnp.concatenate([s, sq], axis=0)   # (2, Cpad)


def _bn_act_kernel(c_ref, s_ref, b_ref, o_ref):
    """y = relu(conv * scale + bias)   (folded BatchNorm + ReLU)."""
    y = c_ref[...] * s_ref[...] + b_ref[...]
    o_ref[...] = jnp.maximum(y, 0.0).astype(o_ref.dtype)


def _bn_add_act_kernel(c_ref, s_ref, b_ref, r_ref, o_ref):
    """y = relu(conv * scale + bias + residual)."""
    y = c_ref[...] * s_ref[...] + b_ref[...] + r_ref[...]
    o_ref[...] = jnp.maximum(y, 0.0).astype(o_ref.dtype)


# ---------------------------------------------------------------------------
# pallas_call wrappers
# ---------------------------------------------------------------------------
def _round_up(x, m):
    return (x + m - 1) // m * m


def _conv_stats(patches, w_flat, tm):
    m_pad, k = patches.shape
    cpad = w_flat.shape[1]
    n_tiles = m_pad // tm
    itemsize = patches.dtype.itemsize
    bytes_acc = int(m_pad * k * itemsize + k * cpad * itemsize
                    + m_pad * cpad * 4 + n_tiles * 2 * cpad * 4)
    return pl.pallas_call(
        _conv_stats_kernel,
        out_shape=(jax.ShapeDtypeStruct((m_pad, cpad), jnp.float32),
                   jax.ShapeDtypeStruct((n_tiles, 2, cpad), jnp.float32)),
        grid=(n_tiles,),
        in_specs=[pl.BlockSpec((tm, k), lambda i: (i, 0)),        # pixel tiles
                  pl.BlockSpec((k, cpad), lambda i: (0, 0))],     # resident weights
        out_specs=[pl.BlockSpec((tm, cpad), lambda i: (i, 0)),
                   pl.BlockSpec((1, 2, cpad), lambda i: (i, 0, 0))],
        compiler_params=_COMPILER_PARAMS,
        cost_estimate=pl.CostEstimate(flops=int(2 * m_pad * k * cpad),
                                      transcendentals=0,
                                      bytes_accessed=bytes_acc),
    )(patches, w_flat)


def _bn_act(conv, scale, bias, residual, out_dtype, tm):
    m_pad, cpad = conv.shape
    n_tiles = m_pad // tm
    row_spec = pl.BlockSpec((tm, cpad), lambda i: (i, 0))
    vec_spec = pl.BlockSpec((1, cpad), lambda i: (0, 0))          # resident scale/bias
    if residual is None:
        kernel, ins = _bn_act_kernel, (conv, scale, bias)
        in_specs = [row_spec, vec_spec, vec_spec]
    else:
        kernel, ins = _bn_add_act_kernel, (conv, scale, bias, residual)
        in_specs = [row_spec, vec_spec, vec_spec, row_spec]
    bytes_acc = int(sum(int(a.size) * a.dtype.itemsize for a in ins)
                    + m_pad * cpad * jnp.dtype(out_dtype).itemsize)
    return pl.pallas_call(
        kernel,
        out_shape=jax.ShapeDtypeStruct((m_pad, cpad), out_dtype),
        grid=(n_tiles,),
        in_specs=in_specs,
        out_specs=row_spec,
        compiler_params=_COMPILER_PARAMS,
        cost_estimate=pl.CostEstimate(flops=int(4 * m_pad * cpad),
                                      transcendentals=0,
                                      bytes_accessed=bytes_acc),
    )(*ins)


# ---------------------------------------------------------------------------
# Plain-JAX glue
# ---------------------------------------------------------------------------
def _im2col_3x3(x_nhwc):
    """(N,H,W,C) -> (N*H*W, 9*C) patches for a 3x3 'same' (pad=1) convolution."""
    n, h, w, c = x_nhwc.shape
    xp = jnp.pad(x_nhwc, ((0, 0), (1, 1), (1, 1), (0, 0)))
    cols = [xp[:, kh:kh + h, kw:kw + w, :] for kh in range(3) for kw in range(3)]
    patches = jnp.stack(cols, axis=3)                  # (N,H,W,9,C)
    return patches.reshape(n * h * w, 9 * c)


def _pad_cols(a, n):
    return a if a.shape[1] == n else jnp.pad(a, ((0, 0), (0, n - a.shape[1])))


def _pad_rows(a, n):
    return a if a.shape[0] == n else jnp.pad(a, ((0, n - a.shape[0]), (0, 0)))


def _finalize_bn(stats, gamma, beta, m_real, cpad):
    """Combine per-tile partial stats -> folded per-channel scale / bias."""
    tot = jnp.sum(stats, axis=0)                       # (2, Cpad)
    mean = tot[0] / m_real
    ex2 = tot[1] / m_real
    var = jnp.maximum(ex2 - mean * mean, 0.0)          # biased batch variance
    g = jnp.zeros((cpad,), jnp.float32).at[:gamma.shape[0]].set(gamma.astype(jnp.float32))
    b = jnp.zeros((cpad,), jnp.float32).at[:beta.shape[0]].set(beta.astype(jnp.float32))
    scale = g * jax.lax.rsqrt(var + EPS)
    bias = b - mean * scale
    return scale.reshape(1, cpad), bias.reshape(1, cpad)


def basic_block_forward(x_nchw, params, *, matmul_dtype=jnp.bfloat16, tm=512):
    """Pallas implementation of BasicBlock.forward (stride=1, downsample=None)."""
    n, cin, h, w = x_nchw.shape
    cout = params["conv1"].shape[0]
    assert cin == cout, "identity residual requires inplanes == planes"
    cpad = _round_up(cout, 128)                        # lane-dense output channels
    m = n * h * w
    tm = min(tm, _round_up(m, 8))                      # tile rows (multiple of 8)
    m_pad = _round_up(m, tm)

    x = jnp.transpose(x_nchw, (0, 2, 3, 1)).astype(jnp.float32)    # NHWC f32

    # weight layout: (Cout,Cin,3,3) -> (9*Cin, Cout) -> pad cols to Cpad
    w1 = jnp.transpose(params["conv1"], (2, 3, 1, 0)).reshape(9 * cin, cout)
    w2 = jnp.transpose(params["conv2"], (2, 3, 1, 0)).reshape(9 * cout, cout)
    w1p = _pad_cols(w1, cpad).astype(matmul_dtype)
    w2p = _pad_cols(w2, cpad).astype(matmul_dtype)

    # ---- conv1 -> bn1(batch stats) -> relu ----
    p1 = _pad_rows(_im2col_3x3(x).astype(matmul_dtype), m_pad)
    conv1, st1 = _conv_stats(p1, w1p, tm)
    s1, b1 = _finalize_bn(st1, params["bn1_gamma"], params["bn1_beta"], m, cpad)
    out1 = _bn_act(conv1, s1, b1, None, matmul_dtype, tm)          # bf16 intermediate

    # ---- conv2 -> bn2(batch stats) -> + residual -> relu ----
    out1_nhwc = out1[:m, :cout].reshape(n, h, w, cout)
    p2 = _pad_rows(_im2col_3x3(out1_nhwc).astype(matmul_dtype), m_pad)
    conv2, st2 = _conv_stats(p2, w2p, tm)
    s2, b2 = _finalize_bn(st2, params["bn2_gamma"], params["bn2_beta"], m, cpad)
    resid = _pad_rows(_pad_cols(x.reshape(m, cin), cpad), m_pad)   # f32 identity residual
    out2 = _bn_act(conv2, s2, b2, resid, jnp.float32, tm)

    out_nhwc = out2[:m, :cout].reshape(n, h, w, cout)
    return jnp.transpose(out_nhwc, (0, 3, 1, 2))                   # back to NCHW


# ---------------------------------------------------------------------------
# Pure-JAX reference (for correctness check)
# ---------------------------------------------------------------------------
def _ref_bn(x_nhwc, gamma, beta):
    mean = jnp.mean(x_nhwc, axis=(0, 1, 2), keepdims=True)
    var = jnp.mean((x_nhwc - mean) ** 2, axis=(0, 1, 2), keepdims=True)
    return (x_nhwc - mean) * jax.lax.rsqrt(var + EPS) * gamma + beta


def _ref_conv3x3(x_nhwc, w_oihw):
    w_hwio = jnp.transpose(w_oihw, (2, 3, 1, 0))
    return jax.lax.conv_general_dilated(
        x_nhwc, w_hwio, window_strides=(1, 1), padding="SAME",
        dimension_numbers=("NHWC", "HWIO", "NHWC"))


def ref_forward(x_nchw, params):
    x = jnp.transpose(x_nchw, (0, 2, 3, 1)).astype(jnp.float32)
    out = _ref_conv3x3(x, params["conv1"])
    out = jnp.maximum(_ref_bn(out, params["bn1_gamma"], params["bn1_beta"]), 0.0)
    out = _ref_conv3x3(out, params["conv2"])
    out = _ref_bn(out, params["bn2_gamma"], params["bn2_beta"])
    out = jnp.maximum(out + x, 0.0)
    return jnp.transpose(out, (0, 3, 1, 2))


# ---------------------------------------------------------------------------
if __name__ == "__main__":
    key = jax.random.PRNGKey(0)
    N, C, H, W = 2, 4, 16, 16          # inplanes = planes = 4, stride = 1
    k_x, k_w1, k_w2, k_g1, k_b1, k_g2, k_b2 = jax.random.split(key, 7)

    x = jax.random.normal(k_x, (N, C, H, W), dtype=jnp.float32)
    params = {
        "conv1": 0.1 * jax.random.normal(k_w1, (C, C, 3, 3), dtype=jnp.float32),
        "conv2": 0.1 * jax.random.normal(k_w2, (C, C, 3, 3), dtype=jnp.float32),
        "bn1_gamma": 1.0 + 0.1 * jax.random.normal(k_g1, (C,), dtype=jnp.float32),
        "bn1_beta": 0.1 * jax.random.normal(k_b1, (C,), dtype=jnp.float32),
        "bn2_gamma": 1.0 + 0.1 * jax.random.normal(k_g2, (C,), dtype=jnp.float32),
        "bn2_beta": 0.1 * jax.random.normal(k_b2, (C,), dtype=jnp.float32),
    }

    ref = jax.block_until_ready(ref_forward(x, params))

    # Strict structural check: f32 matmul inputs, multi-tile grid (tm=128 -> 4 tiles).
    out_f32 = jax.block_until_ready(
        basic_block_forward(x, params, matmul_dtype=jnp.float32, tm=128))
    assert out_f32.shape == (N, C, H, W), out_f32.shape
    err_f32 = float(jnp.max(jnp.abs(out_f32 - ref)))
    assert err_f32 < 1e-4, err_f32

    # Default fast path: bf16 MXU inputs (looser tolerance due to bf16 rounding).
    out_bf16 = jax.block_until_ready(basic_block_forward(x, params, tm=128))
    assert out_bf16.shape == (N, C, H, W), out_bf16.shape
    err_bf16 = float(jnp.max(jnp.abs(out_bf16 - ref)))
    assert err_bf16 < 1e-1, err_bf16

    print("KERNEL_OK")
</pallas_src>

<mosaic_0001>
module attributes {stable_mosaic.version = 11 : i64} {
  func.func @_conv_stats_kernel(%arg0: i32, %arg1: memref<128x36xf32, #tpu.memory_space<vmem>>, %arg2: memref<36x128xf32, #tpu.memory_space<vmem>>, %arg3: memref<128x128xf32, #tpu.memory_space<vmem>>, %arg4: memref<1x2x128xf32, #tpu.memory_space<vmem>>) attributes {dimension_semantics = [#tpu.dimension_semantics<parallel>], iteration_bounds = array<i64: 4>, scalar_prefetch = 0 : i64, scratch_operands = 0 : i64, tpu.core_type = #tpu.core_type<tc>, window_params = [{transform_indices = @transform_0, window_bounds = array<i64: 128, 36>}, {pipeline_mode = #tpu.pipeline_mode<synchronous>, transform_indices = @transform_1, window_bounds = array<i64: 36, 128>}, {transform_indices = @transform_2, window_bounds = array<i64: 128, 128>}, {transform_indices = @transform_3, window_bounds = array<i64: 1, 2, 128>}]} {
    %c0 = arith.constant 0 : index
    %c0_0 = arith.constant 0 : index
    %0 = vector.load %arg1[%c0, %c0_0] : memref<128x36xf32, #tpu.memory_space<vmem>>, vector<128x36xf32>
    %c0_1 = arith.constant 0 : index
    %c0_2 = arith.constant 0 : index
    %1 = vector.load %arg2[%c0_1, %c0_2] : memref<36x128xf32, #tpu.memory_space<vmem>>, vector<36x128xf32>
    %cst = arith.constant dense<0.000000e+00> : vector<128x128xf32>
    %2 = tpu.matmul %0, %1, %cst {dimension_numbers = #tpu.dot_dimension_numbers<[1], [0], [0], [1], [0, 0, 1, 1], [], []>} : vector<128x36xf32>, vector<36x128xf32>, vector<128x128xf32> -> vector<128x128xf32>
    %c0_3 = arith.constant 0 : index
    %c0_4 = arith.constant 0 : index
    %3 = vector.load %arg3[%c0_3, %c0_4] : memref<128x128xf32, #tpu.memory_space<vmem>>, vector<128x128xf32>
    tpu.vector_store %arg3[%c0_3, %c0_4], %2 {strides = array<i32>} : memref<128x128xf32, #tpu.memory_space<vmem>>, vector<128x128xf32>,
    %cst_5 = arith.constant dense<0.000000e+00> : vector<128xf32>
    %4 = vector.multi_reduction <add>, %2, %cst_5 [0] : vector<128x128xf32> to vector<128xf32>
    %5 = vector.shape_cast %4 : vector<128xf32> to vector<1x128xf32>
    %6 = arith.mulf %2, %2 : vector<128x128xf32>
    %cst_6 = arith.constant dense<0.000000e+00> : vector<128xf32>
    %7 = vector.multi_reduction <add>, %6, %cst_6 [0] : vector<128x128xf32> to vector<128xf32>
    %8 = vector.shape_cast %7 : vector<128xf32> to vector<1x128xf32>
    %9 = tpu.concatenate %5, %8 in 0 : vector<1x128xf32>, vector<1x128xf32> -> vector<2x128xf32>
    %c0_7 = arith.constant 0 : index
    %c0_8 = arith.constant 0 : index
    %c0_9 = arith.constant 0 : index
    %10 = vector.load %arg4[%c0_7, %c0_8, %c0_9] : memref<1x2x128xf32, #tpu.memory_space<vmem>>, vector<1x2x128xf32>
    %11 = vector.shape_cast %10 : vector<1x2x128xf32> to vector<2x128xf32>
    %12 = vector.shape_cast %9 : vector<2x128xf32> to vector<1x2x128xf32>
    tpu.vector_store %arg4[%c0_7, %c0_8, %c0_9], %12 {strides = array<i32>} : memref<1x2x128xf32, #tpu.memory_space<vmem>>, vector<1x2x128xf32>,
    return
  }
  func.func @transform_0(%arg0: i32) -> (i32, i32) {
    %c0_i32 = arith.constant 0 : i32
    %c0_i32_0 = arith.constant 0 : i32
    return %arg0, %c0_i32 : i32, i32
  }
  func.func @transform_1(%arg0: i32) -> (i32, i32) {
    %c0_i32 = arith.constant 0 : i32
    %c0_i32_0 = arith.constant 0 : i32
    %c0_i32_1 = arith.constant 0 : i32
    return %c0_i32, %c0_i32_0 : i32, i32
  }
  func.func @transform_2(%arg0: i32) -> (i32, i32) {
    %c0_i32 = arith.constant 0 : i32
    %c0_i32_0 = arith.constant 0 : i32
    return %arg0, %c0_i32 : i32, i32
  }
  func.func @transform_3(%arg0: i32) -> (i32, i32, i32) {
    %c0_i32 = arith.constant 0 : i32
    %c0_i32_0 = arith.constant 0 : i32
    %c0_i32_1 = arith.constant 0 : i32
    return %arg0, %c0_i32, %c0_i32_0 : i32, i32, i32
  }
}

</mosaic_0001>

<bundles_post_ra>
// kernel: tpu_custom_call.1
= control target key start
LH: loop header
LB: loop body
LE: loop exit
PB: predicated region body
PF: predicated region fallthrough
CT: control target
= control target key end

     0   :  { %9 = vsyncpa [#allocation3], 0  ;;  %s1117_s0 = inlined_call_operand.vmem [shape: f32[512,36], index: 0, kind: input, shape index: {}]   ;;  %s1118_s1 = inlined_call_operand.vmem [shape: f32[36,128], index: 1, kind: input, shape index: {}]   ;;  %s1119_s2 = inlined_call_operand.hbm [shape: f32[512,128], index: 2, kind: output, shape index: {0}]   ;;  %s1120_s3 = inlined_call_operand.hbm [shape: f32[4,2,128], index: 3, kind: output, shape index: {1}]  }
   0x1   :  { %11 = vsyncpa [#allocation3 + $0x1], 0 }
   0x2   :  { %12 = vsyncpa [#allocation5], 0 }
   0x3   :  { %14 = vsyncpa [#allocation5 + $0x1], 0  ;;  %s873_s12 = smov 0   ;;  %s875_s13 = smov 0  }
   0x4   :  { %s877_s14 = smov 0   ;;  %s879_s15 = smov 0  }
   0x5 LB: > { %s894_s16 = sadd.s32 4294967295, %s847_s15   ;;  %s605_s17 = sadd.s32 4294967294, %s847_s15   ;;  %s847_s15 = sphi %s879_s15, %s1126_s15   ;;  %s843_s14 = sphi %s877_s14, %s1125_s14   ;;  %s839_s13 = sphi %s875_s13, %s1124_s13   ;;  %s835_s12 = sphi %s873_s12, %s1123_s12  }
   0x6   : > { %s898_s18 = sadd.s32 1, %s847_s15   ;;  %s74_s19 = sadd.s32 1, %s843_s14 }
   0x7   : > { %s71_s20 = ssub.s32 %s847_s15, %s898_s18  ;;  %p84_p0 = scmp.ne.s32.totalorder %s843_s14, %s839_s13 }
   0x8   : > { %p72_p1 = scmp.eq.s32.totalorder %s71_s20, 0  ;;  %p85_p2 = scmp.eq.s32.totalorder %s894_s16, 3 }
   0x9   : > { %p90_p3 = scmp.ne.s32.totalorder %s839_s13, %s835_s12  ;;  %p91_p4 = scmp.eq.s32.totalorder %s605_s17, 3 }
   0xa   : > { %s909_s21 = scalar_select %p72_p1, %s843_s14, %s74_s19  }
   0xb   : > { %p911_p5 = por %p85_p2, %p84_p0  ;;  %p915_p6 = por %p91_p4, %p90_p3 }
   0xc   : > { %p608_p7 = scmp.ge.s32.totalorder %s847_s15, 1  ;;  %p147_p8 = scmp.lt.s32.totalorder %s847_s15, 5 }
   0xe   : > { %p148_p9 = pnand %p608_p7, %p147_p8 }
   0xf   : > { %v199_v0 = vld [vmem:[%s1118_s1] sm:$0xff] (!%p148_p9)  ;;  %v200_v1 = vld [vmem:[%s1118_s1 + $0x8] sm:$0xff] (!%p148_p9)  ;;  %v201_v2 = vld [vmem:[%s1118_s1 + $0x10] sm:$0xff] (!%p148_p9)  ;;  %s611_s30 = sshll.u32 (!%p148_p9), %s894_s16, 4  ;;  %vm204_vm0 = vcmask (!%p148_p9), 293888   ;;  %vm253_vm1 = vcmask (!%p148_p9), 1043456  }
  0x10   : > { %151 = sbr.rel (%p148_p9) target bundleno = 313 (0x139), region = 28  ;;  %v693_v3 = vpack.c.bf16 (!%p148_p9), %v200_v1, %v199_v0  ;;  %v202_v4 = vld [vmem:[%s1118_s1 + $0x18] sm:$0xff] (!%p148_p9)  ;;  %p177_p10 = scmp.lt.s32.totalorder (!%p148_p9), %s611_s30, 63  ;;  %v203_v6 = vld [vmem:[%s1118_s1 + $0x20] sm:$0xf] (!%p148_p9) }
  0x11   : > { %v697_v5 = vpack.c.bf16 (!%p148_p9), %v202_v4, %v201_v2  ;;  %s979_s17 = sand.u32 (!%p148_p9), 1, %s839_s13   ;;  %s637_s24 = sshll.u32 (!%p148_p9), %s894_s16, 11 }
  0x12   : > { %694 = vmatprep.subr.bf16.mxu0 (!%p148_p9), %v693_v3  ;;  %701 = vmatprep.subr.bf16.mxu1 (!%p148_p9), %v693_v3  ;;  %s609_s19 = sshll.u32 (!%p148_p9), %s979_s17, 7  ;;  %s1019_s28 = scalar_lea.hbm (!%p148_p9), %s1119_s2, %s637_s24 }
  0x13   : > { %696 = vmatpush3.bf16.msra.mxu0 (!%p148_p9), %v693_v3  ;;  %704 = vmatpush3.bf16.msra.mxu1 (!%p148_p9), %v693_v3  ;;  %s982_s20 = scalar_lea.vmem (!%p148_p9), [#allocation2], %s609_s19  ;;  %s480_s29 = scalar_lea.sflag (!%p148_p9), [#allocation3], %s979_s17 }
  0x14   : > { %698 = vmatprep.subr.bf16.mxu0 (!%p148_p9), %v697_v5  ;;  %702 = vmatprep.subr.bf16.mxu1 (!%p148_p9), %v697_v5  ;;  %s498_s25 = sshll.u32 (!%p148_p9), %s982_s20, 4  ;;  %s849_s4 = smov (!%p148_p9), [#allocation2]   ;;  %s1021_s25 = int_to_ptr.vmem [resolvable:$true] %s498_s25 }
  0x15   : > { %s757_s5 = sshll.u32 (!%p148_p9), %s849_s4, 4  ;;  %s758_s5 = int_to_ptr.vmem [resolvable:$false] %s757_s5 }
  0x16   : > { %p760_p0 = scmp.lt.s32.totalorder (!%p148_p9), %s1021_s25, %s758_s5 }
  0x17   : > { %s1128_s30 = smov (!%p177_p10, %s611_s30), 63  ;;  %700 = vmatpush3.bf16.msra.mxu0 %v697_v5  ;;  %705 = vmatpush3.bf16.msra.mxu1 %v697_v5 }
  0x18   : > { %s612_s6 = sshll.u32 %s1128_s30, 3  ;;  %667 = vmatprep.subr.msk.mxu0 %vm253_vm1, %v203_v6  ;;  %703 = vmatprep.subr.msk.mxu1 %vm253_vm1, %v203_v6  ;;  %s753_s30 = scalar_lea.vmem %s1021_s25, 2048 }
  0x19   : > { %s940_s11 = scalar_lea.vmem %s1117_s0, %s612_s6  ;;  %p754_p11 = scmp.ne.s32.totalorder %s1021_s25, %s753_s30 }
  0x1a   : > { %v183_v7 = vld [vmem:[%s940_s11] sm:$0xff]  ;;  %v184_v9 = vld [vmem:[%s940_s11 + $0x8] sm:$0xff]  ;;  %v185_v10 = vld [vmem:[%s940_s11 + $0x10] sm:$0xff]  ;;  %s759_s6 = scalar_lea.vmem %s758_s5, 4096 }
  0x1b   : > { %669 = vmatprep.mubr.msk.f32.mxu0 %vm204_vm0, %v183_v7  ;;  %v191_v8 = vld [vmem:[%s940_s11 + $0x40] sm:$0xff]  ;;  %v192_v11 = vld [vmem:[%s940_s11 + $0x48] sm:$0xff]  ;;  %668 = vmatpush3.msk.msra.mxu0 %vm253_vm1, %v203_v6  ;;  %v193_v12 = vld [vmem:[%s940_s11 + $0x50] sm:$0xff]  ;;  %p755_p12 = pnand %p754_p11, %p911_p5  ;;  %p761_p1 = scmp.lt.s32.totalorder %s759_s6, %s753_s30 }
  0x1c   : > { %681 = vmatprep.mubr.msk.f32.mxu1 %vm204_vm0, %v191_v8  ;;  %670 = vmatmul.mubr.msk.f32.vlgmr.msra.gmra.mrb[0].mxu0 %vm204_vm0, %v184_v9  ;;  %v186_v13 = vld [vmem:[%s940_s11 + $0x18] sm:$0xff]  ;;  %v187_v14 = vld [vmem:[%s940_s11 + $0x20] sm:$0xff]  ;;  %v188_v17 = vld [vmem:[%s940_s11 + $0x28] sm:$0xff] }
  0x1d   : > { %706 = vmatpush3.msk.msra.mxu1 %vm253_vm1, %v203_v6  ;;  %672 = vmatprep.mubr.msk.f32.mxu0 %vm204_vm0, %v185_v10  ;;  %v194_v15 = vld [vmem:[%s940_s11 + $0x58] sm:$0xff]  ;;  %v195_v16 = vld [vmem:[%s940_s11 + $0x60] sm:$0xff]  ;;  %v189_v18 = vld [vmem:[%s940_s11 + $0x30] sm:$0xff]  ;;  %p756_p13 = pneg %p755_p12  ;;  %p762_p2 = por %p761_p1, %p760_p0 }
  0x1e   : > { %682 = vmatmul.mubr.msk.f32.vlgmr.msra.gmra.mrb[0].mxu1 %vm204_vm0, %v192_v11  ;;  %v196_v19 = vld [vmem:[%s940_s11 + $0x68] sm:$0xff]  ;;  %v197_v20 = vld [vmem:[%s940_s11 + $0x70] sm:$0xff]  ;;  %v190_v21 = vld [vmem:[%s940_s11 + $0x38] sm:$0xff] }
  0x1f   : > { %684 = vmatprep.mubr.msk.f32.mxu1 %vm204_vm0, %v193_v12  ;;  %v198_v22 = vld [vmem:[%s940_s11 + $0x78] sm:$0xff]  ;;  %p763_p3 = pnand %p762_p2, %p756_p13 }
  0x20   : > { %673 = vmatmul.mubr.msk.f32.gmra.mrb[2].mxu0 %vm204_vm0, %v186_v13 }
  0x21   : > { %675 = vmatprep.mubr.msk.f32.mxu0 %vm204_vm0, %v187_v14 }
  0x22   : > { %685 = vmatmul.mubr.msk.f32.gmra.mrb[2].mxu1 %vm204_vm0, %v194_v15 }
  0x23   : > { %687 = vmatprep.mubr.msk.f32.mxu1 %vm204_vm0, %v195_v16 }
  0x24   : > { %676 = vmatmul.mubr.msk.f32.gmra.mrb[4].mxu0 %vm204_vm0, %v188_v17 }
  0x25   : > { %678 = vmatprep.mubr.msk.f32.mxu0 %vm204_vm0, %v189_v18 }
  0x26   : > { %688 = vmatmul.mubr.msk.f32.gmra.mrb[4].mxu1 %vm204_vm0, %v196_v19 }
  0x27   : > { %690 = vmatprep.mubr.msk.f32.mxu1 %vm204_vm0, %v197_v20 }
  0x28   : > { %679 = vmatmul.mubr.msk.f32.gmra.mrb[6].mxu0 %vm204_vm0, %v190_v21 }
  0x2a   : > { %691 = vmatmul.mubr.msk.f32.gmra.mrb[6].mxu1 %vm204_vm0, %v198_v22 }
  0xef   : > { %v671_v23 = vpop.f32.mrb[0].mxu0 }
  0xf0   : > { %403 = vst [vmem:[%s982_s20 + $0x8] sm:$0xff] %v671_v23  ;;  %v440_v24 = vmul.f32 %v671_v23, %v671_v23  ;;  %v323_v25 = vpop.f32.mrb[1].mxu0 }
  0xf1   : > { %v985_v26 = vpop.f32.mrb[0].mxu1  ;;  %402 = vst [vmem:[%s982_s20] sm:$0xff] %v323_v25  ;;  %v418_v27 = vadd.f32 %v671_v23, %v323_v25  ;;  %v439_v28 = vmul.f32 %v323_v25, %v323_v25 }
  0xf2   : > { %411 = vst [vmem:[%s982_s20 + $0x48] sm:$0xff] %v985_v26  ;;  %v990_v29 = vpop.f32.mrb[1].mxu1 }
  0xf3   : > { %410 = vst [vmem:[%s982_s20 + $0x40] sm:$0xff] %v990_v29  ;;  %v455_v30 = vadd.f32 %v440_v24, %v439_v28  ;;  %v674_v31 = vpop.f32.mrb[2].mxu0  ;;  %v447_v60 = vmul.f32 %v990_v29, %v990_v29 }
  0xf4   : > { %405 = vst [vmem:[%s982_s20 + $0x18] sm:$0xff] %v674_v31  ;;  %v333_v32 = vpop.f32.mrb[3].mxu0  ;;  %v442_v37 = vmul.f32 %v674_v31, %v674_v31 }
  0xf5   : > { %v995_v33 = vpop.f32.mrb[2].mxu1  ;;  %404 = vst [vmem:[%s982_s20 + $0x10] sm:$0xff] %v333_v32  ;;  %v419_v34 = vadd.f32 %v418_v27, %v333_v32  ;;  %v441_v35 = vmul.f32 %v333_v32, %v333_v32 }
  0xf6   : > { %413 = vst [vmem:[%s982_s20 + $0x58] sm:$0xff] %v995_v33  ;;  %v1000_v36 = vpop.f32.mrb[3].mxu1 }
  0xf7   : > { %412 = vst [vmem:[%s982_s20 + $0x50] sm:$0xff] %v1000_v36  ;;  %v456_v38 = vadd.f32 %v455_v30, %v441_v35  ;;  %v677_v39 = vpop.f32.mrb[4].mxu0  ;;  %v420_v40 = vadd.f32 %v674_v31, %v419_v34 }
  0xf8   : > { %407 = vst [vmem:[%s982_s20 + $0x28] sm:$0xff] %v677_v39  ;;  %v343_v41 = vpop.f32.mrb[5].mxu0  ;;  %v444_v47 = vmul.f32 %v677_v39, %v677_v39 }
  0xf9   : > { %v1005_v42 = vpop.f32.mrb[4].mxu1  ;;  %406 = vst [vmem:[%s982_s20 + $0x20] sm:$0xff] %v343_v41  ;;  %v421_v43 = vadd.f32 %v420_v40, %v343_v41  ;;  %v443_v44 = vmul.f32 %v343_v41, %v343_v41  ;;  %v457_v45 = vadd.f32 %v456_v38, %v442_v37 }
  0xfa   : > { %415 = vst [vmem:[%s982_s20 + $0x68] sm:$0xff] %v1005_v42  ;;  %v1012_v46 = vpop.f32.mrb[5].mxu1 }
  0xfb   : > { %414 = vst [vmem:[%s982_s20 + $0x60] sm:$0xff] %v1012_v46  ;;  %v458_v48 = vadd.f32 %v457_v45, %v443_v44  ;;  %v680_v49 = vpop.f32.mrb[6].mxu0  ;;  %v422_v50 = vadd.f32 %v677_v39, %v421_v43 }
  0xfc   : > { %409 = vst [vmem:[%s982_s20 + $0x38] sm:$0xff] %v680_v49  ;;  %v353_v51 = vpop.f32.mrb[7].mxu0  ;;  %v446_v57 = vmul.f32 %v680_v49, %v680_v49 }
  0xfd   : > { %v692_v52 = vpop.f32.mrb[6].mxu1  ;;  %408 = vst [vmem:[%s982_s20 + $0x30] sm:$0xff] %v353_v51  ;;  %v423_v53 = vadd.f32 %v422_v50, %v353_v51  ;;  %v445_v54 = vmul.f32 %v353_v51, %v353_v51  ;;  %v459_v55 = vadd.f32 %v458_v48, %v444_v47 }
  0xfe   : > { %417 = vst [vmem:[%s982_s20 + $0x78] sm:$0xff] %v692_v52  ;;  %v393_v56 = vpop.f32.mrb[7].mxu1 }
  0xff   : > { %416 = vst [vmem:[%s982_s20 + $0x70] sm:$0xff] %v393_v56  ;;  %v424_v58 = vadd.f32 %v680_v49, %v423_v53  ;;  %v460_v59 = vadd.f32 %v459_v55, %v445_v54 }
 0x100   : > { %766 = shalt.err (!%p763_p3)
}
 0x101   : > { %s767_s7 = scalar_lea.hbm %s1019_s28, 2048  ;;  %s771_s10 = scalar_lea.hbm %s1119_s2, 8192 }
 0x102   : > { %p768_p4 = scmp.ne.s32.totalorder %s1019_s28, %s767_s7  ;;  %p772_p9 = scmp.lt.u32.totalorder %s1019_s28, %s1119_s2 }
 0x103   : > { %p773_p10 = scmp.lt.u32.totalorder %s771_s10, %s767_s7  ;;  %p775_p12 = scmp.lt.u32.totalorder %s767_s7, %s1019_s28 }
 0x104   : > { %p769_p7 = pnand %p768_p4, %p911_p5 }
 0x105   : > { %p774_p11 = por %p773_p10, %p772_p9 }
 0x106   : > { %p770_p8 = pneg %p769_p7 }
 0x107   : > { %p776_p13 = por %p775_p12, %p774_p11 }
 0x109   : > { %p777_p0 = pnand %p776_p13, %p770_p8 }
 0x10b   : > { %780 = shalt.err (!%p777_p0)
}
 0x10c   : > { %s850_s20 = smov 128   ;;  %s851_s24 = smov 8   ;;  %v461_v61 = vadd.f32 %v460_v59, %v446_v57  ;;  %v425_v62 = vadd.f32 %v424_v58, %v990_v29  ;;  %v448_v63 = vmul.f32 %v985_v26, %v985_v26  ;;  %v449_v2 = vmul.f32 %v1000_v36, %v1000_v36 }
 0x10d   : > { %707 = dma.vmem_to_hbm [thread:$0]  (%p911_p5), %s1021_s25, 2048, %s1019_s28, %s480_s29, %s850_s20, %s850_s20, %s851_s24   ;;  %v450_v5 = vmul.f32 %v995_v33, %v995_v33  ;;  %v451_v8 = vmul.f32 %v1012_v46, %v1012_v46  ;;  %v452_v11 = vmul.f32 %v1005_v42, %v1005_v42  ;;  %v453_v14 = vmul.f32 %v393_v56, %v393_v56 }
 0x10e   : > { %v462_v0 = vadd.f32 %v461_v61, %v447_v60  ;;  %v426_v1 = vadd.f32 %v985_v26, %v425_v62  ;;  %v454_v17 = vmul.f32 %v692_v52, %v692_v52  ;;  %s610_s25 = sshll.u32 %s979_s17, 1  ;;  %s634_s26 = sshll.u32 %s894_s16, 5  ;;  %vm476_vm2 = vcmask 1040384  }
 0x10f   : > { %s175_s27 = scalar_lea.vmem [#allocation4], %s610_s25  ;;  %s1074_s4 = scalar_lea.hbm %s1120_s3, %s634_s26 }
 0x110   : > { %v427_v3 = vadd.f32 %v426_v1, %v1000_v36  ;;  %v463_v4 = vadd.f32 %v462_v0, %v448_v63  ;;  %s514_s28 = sshll.u32 %s175_s27, 4  ;;  %s485_s5 = scalar_lea.sflag [#allocation5], %s979_s17  ;;  %s1076_s28 = int_to_ptr.vmem [resolvable:$true] %s514_s28 }
 0x111   : > { %s781_s6 = scalar_lea.vmem %s1076_s28, 32  ;;  %s852_s16 = smov [#allocation4]  }
 0x112   : > { %v464_v6 = vadd.f32 %v463_v4, %v449_v2  ;;  %v428_v7 = vadd.f32 %v995_v33, %v427_v3  ;;  %p782_p1 = scmp.ne.s32.totalorder %s1076_s28, %s781_s6  ;;  %s785_s7 = sshll.u32 %s852_s16, 4  ;;  %s786_s7 = int_to_ptr.vmem [resolvable:$false] %s785_s7 }
 0x113   : > { %s787_s8 = scalar_lea.vmem %s786_s7, 64  ;;  %p788_p4 = scmp.lt.s32.totalorder %s1076_s28, %s786_s7 }
 0x114   : > { %v429_v9 = vadd.f32 %v428_v7, %v1012_v46  ;;  %v465_v10 = vadd.f32 %v464_v6, %v450_v5  ;;  %p783_p2 = pnand %p782_p1, %p911_p5  ;;  %p789_p7 = scmp.lt.s32.totalorder %s787_s8, %s781_s6 }
 0x116   : > { %v466_v12 = vadd.f32 %v465_v10, %v451_v8  ;;  %v430_v13 = vadd.f32 %v1005_v42, %v429_v9  ;;  %p784_p3 = pneg %p783_p2  ;;  %p790_p8 = por %p789_p7, %p788_p4 }
 0x118   : > { %v431_v15 = vadd.f32 %v430_v13, %v393_v56  ;;  %v467_v16 = vadd.f32 %v466_v12, %v452_v11  ;;  %p791_p9 = pnand %p790_p8, %p784_p3 }
 0x11a   : > { %v432_v18 = vadd.f32 %v692_v52, %v431_v15  ;;  %v468_v19 = vadd.f32 %v467_v16, %v453_v14 }
 0x11c   : > { %v433_v20 = vrot.slane %v432_v18, 4  ;;  %v469_v21 = vadd.f32 %v468_v19, %v454_v17 }
 0x11e   : > { %v434_v22 = vadd.f32 %v433_v20, %v432_v18  ;;  %v470_v23 = vrot.slane %v469_v21, 4 }
 0x120   : > { %v435_v24 = vrot.slane %v434_v22, 2  ;;  %v471_v25 = vadd.f32 %v470_v23, %v469_v21 }
 0x122   : > { %v436_v26 = vadd.f32 %v435_v24, %v434_v22  ;;  %v472_v27 = vrot.slane %v471_v25, 2 }
 0x124   : > { %v437_v28 = vrot.slane %v436_v26, 1  ;;  %v473_v29 = vadd.f32 %v472_v27, %v471_v25 }
 0x126   : > { %v474_v30 = vrot.slane %v473_v29, 1  ;;  %v438_v31 = vadd.f32 %v437_v28, %v436_v26 }
 0x128   : > { %v475_v32 = vadd.f32 %v474_v30, %v473_v29 }
 0x12a   : > { %v477_v33 = vsel %vm476_vm2, %v438_v31, %v475_v32 }
 0x12b   : > { %478 = vst [vmem:[%s175_s27] sm:$0x3] %v477_v33 }
 0x12c   : > { %794 = shalt.err (!%p791_p9)
}
 0x12d   : > { %s795_s17 = scalar_lea.hbm %s1074_s4, 32  ;;  %s799_s11 = scalar_lea.hbm %s1120_s3, 128 }
 0x12e   : > { %p796_p10 = scmp.ne.s32.totalorder %s1074_s4, %s795_s17  ;;  %p800_p13 = scmp.lt.u32.totalorder %s1074_s4, %s1120_s3 }
 0x12f   : > { %p801_p0 = scmp.lt.u32.totalorder %s799_s11, %s795_s17  ;;  %p803_p2 = scmp.lt.u32.totalorder %s795_s17, %s1074_s4 }
 0x130   : > { %p797_p11 = pnand %p796_p10, %p911_p5 }
 0x131   : > { %p802_p1 = por %p801_p0, %p800_p13 }
 0x132   : > { %p798_p12 = pneg %p797_p11 }
 0x133   : > { %p804_p3 = por %p803_p2, %p802_p1 }
 0x135   : > { %p805_p4 = pnand %p804_p3, %p798_p12 }
 0x137   : > { %808 = shalt.err (!%p805_p4)
}
 0x138   : > { %708 = dma.vmem_to_hbm [thread:$0]  (%p911_p5), %s1076_s28, 32, %s1074_s4, %s485_s5  }
 0x139 PF: > { %p718_p7 = scmp.ge.s32.totalorder %s847_s15, 2  ;;  %s526_s24 = sand.u32 1, %s835_s12  }
 0x13a   : > { %s527_s25 = scalar_lea.sflag [#allocation3], %s526_s24 }
 0x13b   : > { %p712_p8 = pnand %p718_p7, %p915_p6 }
 0x13d   : > { %826 = dma.done.wait (!%p712_p8), %s527_s25, 2048  }
 0x13e   : > { %828 = vsyncadd (!%p712_p8), %s527_s25, 4294965248  ;;  %s536_s26 = scalar_lea.sflag [#allocation5], %s526_s24 }
 0x13f   : > { %830 = dma.done.wait (!%p712_p8), %s536_s26, 32  }
 0x140   : > { %832 = vsyncadd (!%p712_p8), %s536_s26, 4294967264  ;;  %p17_p5 = scmp.ge.s32.totalorder %s898_s18, 6   ;;  %s1123_s12 = smov %s839_s13 }
 0x141   : > { %s1124_s13 = smov %s843_s14  ;;  %s1125_s14 = smov %s909_s21 }
 0x142   : > { %s1126_s15 = smov %s898_s18  ;;  %19 = sbr.rel (!%p17_p5) target bundleno = 5 (0x5), region = 80 }
 0x149   :  { %541 = vsyncpa [#allocation3], 1 }
 0x14a   :  { %543 = vsyncpa [#allocation3 + $0x1], 1 }
 0x14b   :  { %544 = vsyncpa [#allocation5], 1 }
 0x14c   :  { %546 = vsyncpa [#allocation5 + $0x1], 1 }

</bundles_post_ra>
